<compile_context>
chip_gen: v6e
topology: v6e:2x2x1
jax: 0.10.0
libtpu: 0.0.40
codegen_flags: <defaults>
</compile_context>

<pallas_src>
import functools

import jax
import jax.numpy as jnp
import numpy as np
from jax import lax
from jax.experimental import pallas as pl
from jax.experimental.pallas import tpu as pltpu


def _round_up(x, m):
    return (x + m - 1) // m * m


def _choose_seq_tile(L, l_tile):
    """Sequence tile: multiple of 8, <= l_tile, preferring an exact divisor of L."""
    lt_max = min(_round_up(L, 8), _round_up(l_tile, 8))
    if L % 8 == 0:
        cand = lt_max
        while cand >= 8:
            if L % cand == 0:
                return cand
            cand -= 8
    return lt_max


def _choose_row_chunk(lt):
    """Row chunk for the in-kernel compute loop (keeps vreg pressure low)."""
    for cand in (128, 64, 32, 16, 8):
        if lt % cand == 0:
            return cand
    return lt  # unreachable: lt is a multiple of 8


def _separable_conv_kernel(x_hbm, w1_ref, w2_ref, b2_ref, o_ref, xbuf, sem, *,
                           k, lt, W, rc, n_tiles):
    # x_hbm : (B, total, Cp) zero-padded input, left in HBM (manual DMA).
    # w1_ref: (k, Cp)   depthwise weights (bias folded into b2).
    # w2_ref: (Cp, Cop) pointwise weights.
    # b2_ref: (1, Cop)  effective pointwise bias (= b2 + b1 @ w2).
    # o_ref : (lt, Cop) output tile.
    # xbuf  : (2, W, Cp) VMEM double buffer for the halo windows.
    # sem   : (2,) DMA semaphores.
    b = pl.program_id(0)
    l = pl.program_id(1)
    slot = lax.rem(l, 2)

    def window_copy(ll, s):
        start = pl.multiple_of(ll * lt, 8)
        return pltpu.make_async_copy(
            x_hbm.at[b, pl.ds(start, W), :], xbuf.at[s], sem.at[s])

    # Prime the pipeline at the first sequence tile of this batch row.
    @pl.when(l == 0)
    def _():
        window_copy(l, slot).start()

    # Prefetch the next tile's halo window into the other buffer slot.
    @pl.when(l + 1 < n_tiles)
    def _():
        window_copy(l + 1, 1 - slot).start()

    # Wait for this tile's halo window (W = lt + k - 1 rows of the padded sequence).
    window_copy(l, slot).wait()

    b2 = b2_ref[...]                       # (1, Cop), tiny
    nc = lt // rc

    def chunk(c, carry):
        r0 = pl.multiple_of(c * rc, 8)
        # Depthwise conv: read shifted slices straight from the VMEM window ref
        # (plain vld traffic, no big hoisted value); f32 accumulation.
        acc = (xbuf[slot, pl.ds(r0, rc), :] * w1_ref[0:1, :]).astype(jnp.float32)
        for j in range(1, k):              # static unroll over taps
            acc = acc + (xbuf[slot, pl.ds(r0 + j, rc), :]
                         * w1_ref[j:j + 1, :]).astype(jnp.float32)
        # Pointwise conv on the MXU (depthwise bias already folded into b2).
        out = jnp.dot(acc.astype(w2_ref.dtype), w2_ref[...],
                      preferred_element_type=jnp.float32) + b2
        o_ref[pl.ds(r0, rc), :] = out.astype(o_ref.dtype)   # lane-dense store
        return carry

    lax.fori_loop(0, nc, chunk, None, unroll=True)


def separable_conv(x, w1, b1, w2, b2, kernel_size, *, l_tile=512):
    """x: (B, L, C); w1: (k, C); b1: (1, C); w2: (C, Co); b2: (1, Co) -> (B, L, Co)."""
    B, L, C = x.shape
    Co = w2.shape[1]
    k = int(kernel_size)
    # PyTorch Conv1d with padding=k//2 only preserves length for odd k.
    assert k % 2 == 1, "SeparableConv kernel assumes odd kernel_size (QANet uses 7)"
    pad_left = k // 2

    Cp = _round_up(C, 128)                 # channels on lanes (full vregs / MXU K)
    Cop = _round_up(Co, 128)               # unmasked lane-dense output stores
    lt = _choose_seq_tile(L, l_tile)       # sequence tile (prefers divisor of L)
    rc = _choose_row_chunk(lt)             # in-kernel row chunk
    n_tiles = -(-L // lt)
    W = _round_up(lt + k - 1, 8)           # halo window rows per tile

    # Single zero-pad of x: pad_left rows in front (so tile l's window starts at
    # padded row l*lt), enough tail rows for the last window, channels to Cp.
    total = (n_tiles - 1) * lt + W
    x_zpad = jnp.pad(x, ((0, 0), (pad_left, total - pad_left - L), (0, Cp - C)))

    w1p = jnp.pad(w1, ((0, 0), (0, Cp - C)))
    w2p = jnp.pad(w2, ((0, Cp - C), (0, Cop - Co)))
    # Fold the depthwise bias into the pointwise bias:
    #   (b1 + dw(x)) @ w2 + b2 = dw(x) @ w2 + (b1 @ w2 + b2)
    b2_eff = b2 + jnp.dot(b1, w2)
    b2p = jnp.pad(b2_eff, ((0, 0), (0, Cop - Co)))

    itemsize = jnp.dtype(x.dtype).itemsize
    vmem_need = (2 * W * Cp * itemsize                 # manual x double buffer
                 + 2 * lt * Cop * itemsize             # pipelined output double buffer
                 + 2 * (k * Cp + Cp * Cop + Cop) * itemsize)   # resident weights/bias
    vmem_limit = int(min(48 * 1024 * 1024, max(2 * vmem_need, 32 * 1024 * 1024)))

    kern = functools.partial(_separable_conv_kernel, k=k, lt=lt, W=W, rc=rc,
                             n_tiles=n_tiles)
    out = pl.pallas_call(
        kern,
        out_shape=jax.ShapeDtypeStruct((B, n_tiles * lt, Cop), x.dtype),
        grid_spec=pltpu.PrefetchScalarGridSpec(
            num_scalar_prefetch=0,
            grid=(B, n_tiles),
            in_specs=[
                pl.BlockSpec(memory_space=pl.ANY),             # x stays in HBM
                pl.BlockSpec((k, Cp), lambda b, l: (0, 0)),    # resident weights
                pl.BlockSpec((Cp, Cop), lambda b, l: (0, 0)),
                pl.BlockSpec((1, Cop), lambda b, l: (0, 0)),
            ],
            out_specs=pl.BlockSpec((pl.Squeezed(), lt, Cop),
                                   lambda b, l: (b, l, 0)),
            scratch_shapes=[
                pltpu.VMEM((2, W, Cp), x.dtype),
                pltpu.SemaphoreType.DMA((2,)),
            ],
        ),
        compiler_params=pltpu.CompilerParams(
            dimension_semantics=("parallel", "arbitrary"),
            vmem_limit_bytes=vmem_limit),
    )(x_zpad, w1p, w2p, b2p)

    if n_tiles * lt == L and Cop == Co:
        return out                          # no-op epilogue when shapes line up
    return out[:, :L, :Co]


def separable_conv_ref(x, w1, b1, w2, b2, k):
    # Pure-JAX reference mirroring the PyTorch module.
    B, L, C = x.shape
    pad = k // 2
    xp = jnp.pad(x, ((0, 0), (pad, k - 1 - pad), (0, 0)))
    acc = jnp.broadcast_to(b1, (B, L, C))
    for j in range(k):
        acc = acc + xp[:, j:j + L, :] * w1[j][None, None, :]
    return jnp.einsum('blc,co->blo', acc, w2) + b2[None]


if __name__ == "__main__":
    # Small shapes consistent with the module's (B, L, nb_dim) forward.
    B, L, nb_dim, nb_out, kernel_size = 2, 16, 32, 64, 3

    key = jax.random.PRNGKey(0)
    kx, k1, k2, k3, k4 = jax.random.split(key, 5)

    x = jax.random.normal(kx, (B, L, nb_dim), dtype=jnp.float32)
    # PyTorch conv1 weight (nb_dim,1,k) stored as (k, nb_dim); conv2 (nb_out,nb_dim,1) as (nb_dim, nb_out).
    w1 = 0.1 * jax.random.normal(k1, (kernel_size, nb_dim), dtype=jnp.float32)
    b1 = 0.1 * jax.random.normal(k2, (1, nb_dim), dtype=jnp.float32)
    w2 = 0.1 * jax.random.normal(k3, (nb_dim, nb_out), dtype=jnp.float32)
    b2 = 0.1 * jax.random.normal(k4, (1, nb_out), dtype=jnp.float32)

    fn = jax.jit(functools.partial(separable_conv, kernel_size=kernel_size))
    out = jax.block_until_ready(fn(x, w1, b1, w2, b2))
    assert out.shape == (B, L, nb_out)

    ref = separable_conv_ref(x, w1, b1[0], w2, b2[0], kernel_size)
    np.testing.assert_allclose(np.asarray(out), np.asarray(ref), rtol=1e-5, atol=1e-5)

    print("KERNEL_OK")
</pallas_src>

<mosaic_0001>
module attributes {stable_mosaic.version = 11 : i64} {
  func.func @_separable_conv_kernel(%arg0: i32, %arg1: i32, %arg2: memref<2x24x128xf32, #tpu.memory_space<any>>, %arg3: memref<3x128xf32, #tpu.memory_space<vmem>>, %arg4: memref<128x128xf32, #tpu.memory_space<vmem>>, %arg5: memref<1x128xf32, #tpu.memory_space<vmem>>, %arg6: memref<1x16x128xf32, #tpu.memory_space<vmem>>, %arg7: memref<2x24x128xf32, #tpu.memory_space<vmem>>, %arg8: memref<2x!tpu.dma_semaphore, #tpu.memory_space<semaphore_mem>>) attributes {dimension_semantics = [#tpu.dimension_semantics<parallel>, #tpu.dimension_semantics<arbitrary>], iteration_bounds = array<i64: 2, 1>, scalar_prefetch = 0 : i64, scratch_operands = 2 : i64, tpu.core_type = #tpu.core_type<tc>, window_params = [{}, {pipeline_mode = #tpu.pipeline_mode<synchronous>, transform_indices = @transform_1, window_bounds = array<i64: 3, 128>}, {pipeline_mode = #tpu.pipeline_mode<synchronous>, transform_indices = @transform_2, window_bounds = array<i64: 128, 128>}, {pipeline_mode = #tpu.pipeline_mode<synchronous>, transform_indices = @transform_3, window_bounds = array<i64: 1, 128>}, {transform_indices = @transform_4, window_bounds = array<i64: 1, 16, 128>}]} {
    %c2_i32 = arith.constant 2 : i32
    %0 = arith.remsi %arg1, %c2_i32 : i32
    %c0_i32 = arith.constant 0 : i32
    %1 = arith.cmpi eq, %arg1, %c0_i32 : i32
    %2 = arith.extui %1 : i1 to i32
    %c0_i32_0 = arith.constant 0 : i32
    %3 = arith.cmpi ne, %2, %c0_i32_0 : i32
    scf.if %3 {
      %c16_i32_23 = arith.constant 16 : i32
      %52 = arith.muli %arg1, %c16_i32_23 : i32
      %53 = tpu.assume_multiple %52, 8 : i32
      %c0_i32_24 = arith.constant 0 : i32
      %54 = tpu.memref_slice %arg2[%arg0, %53, %c0_i32_24] : memref<2x24x128xf32, #tpu.memory_space<any>> -> memref<1x24x128xf32, #tpu.memory_space<any>>
      %55 = tpu.memref_squeeze %54 : memref<1x24x128xf32, #tpu.memory_space<any>> -> memref<24x128xf32, #tpu.memory_space<any>>
      %c0_i32_25 = arith.constant 0 : i32
      %c0_i32_26 = arith.constant 0 : i32
      %56 = tpu.memref_slice %arg7[%0, %c0_i32_25, %c0_i32_26] : memref<2x24x128xf32, #tpu.memory_space<vmem>> -> memref<1x24x128xf32, #tpu.memory_space<vmem>>
      %57 = tpu.memref_squeeze %56 : memref<1x24x128xf32, #tpu.memory_space<vmem>> -> memref<24x128xf32, #tpu.memory_space<vmem>>
      %58 = tpu.memref_slice %arg8[%0] : memref<2x!tpu.dma_semaphore, #tpu.memory_space<semaphore_mem>> -> memref<1x!tpu.dma_semaphore, #tpu.memory_space<semaphore_mem>>
      %59 = tpu.memref_squeeze %58 : memref<1x!tpu.dma_semaphore, #tpu.memory_space<semaphore_mem>> -> memref<!tpu.dma_semaphore, #tpu.memory_space<semaphore_mem>>
      tpu.enqueue_dma source(%55 : memref<24x128xf32, #tpu.memory_space<any>>) target(%57 : memref<24x128xf32, #tpu.memory_space<vmem>>) target_semaphore(%59 : memref<!tpu.dma_semaphore, #tpu.memory_space<semaphore_mem>>)
    } else {
    }
    %c1_i32 = arith.constant 1 : i32
    %4 = arith.addi %arg1, %c1_i32 : i32
    %c1_i32_1 = arith.constant 1 : i32
    %5 = arith.cmpi slt, %4, %c1_i32_1 : i32
    %6 = arith.extui %5 : i1 to i32
    %c0_i32_2 = arith.constant 0 : i32
    %7 = arith.cmpi ne, %6, %c0_i32_2 : i32
    scf.if %7 {
      %c1_i32_23 = arith.constant 1 : i32
      %52 = arith.addi %arg1, %c1_i32_23 : i32
      %c1_i32_24 = arith.constant 1 : i32
      %53 = arith.subi %c1_i32_24, %0 : i32
      %c16_i32_25 = arith.constant 16 : i32
      %54 = arith.muli %52, %c16_i32_25 : i32
      %55 = tpu.assume_multiple %54, 8 : i32
      %c0_i32_26 = arith.constant 0 : i32
      %56 = tpu.memref_slice %arg2[%arg0, %55, %c0_i32_26] : memref<2x24x128xf32, #tpu.memory_space<any>> -> memref<1x24x128xf32, #tpu.memory_space<any>>
      %57 = tpu.memref_squeeze %56 : memref<1x24x128xf32, #tpu.memory_space<any>> -> memref<24x128xf32, #tpu.memory_space<any>>
      %c0_i32_27 = arith.constant 0 : i32
      %c0_i32_28 = arith.constant 0 : i32
      %58 = tpu.memref_slice %arg7[%53, %c0_i32_27, %c0_i32_28] : memref<2x24x128xf32, #tpu.memory_space<vmem>> -> memref<1x24x128xf32, #tpu.memory_space<vmem>>
      %59 = tpu.memref_squeeze %58 : memref<1x24x128xf32, #tpu.memory_space<vmem>> -> memref<24x128xf32, #tpu.memory_space<vmem>>
      %60 = tpu.memref_slice %arg8[%53] : memref<2x!tpu.dma_semaphore, #tpu.memory_space<semaphore_mem>> -> memref<1x!tpu.dma_semaphore, #tpu.memory_space<semaphore_mem>>
      %61 = tpu.memref_squeeze %60 : memref<1x!tpu.dma_semaphore, #tpu.memory_space<semaphore_mem>> -> memref<!tpu.dma_semaphore, #tpu.memory_space<semaphore_mem>>
      tpu.enqueue_dma source(%57 : memref<24x128xf32, #tpu.memory_space<any>>) target(%59 : memref<24x128xf32, #tpu.memory_space<vmem>>) target_semaphore(%61 : memref<!tpu.dma_semaphore, #tpu.memory_space<semaphore_mem>>)
    } else {
    }
    %c16_i32 = arith.constant 16 : i32
    %8 = arith.muli %arg1, %c16_i32 : i32
    %9 = tpu.assume_multiple %8, 8 : i32
    %c0_i32_3 = arith.constant 0 : i32
    %10 = tpu.memref_slice %arg2[%arg0, %9, %c0_i32_3] : memref<2x24x128xf32, #tpu.memory_space<any>> -> memref<1x24x128xf32, #tpu.memory_space<any>>
    %11 = tpu.memref_squeeze %10 : memref<1x24x128xf32, #tpu.memory_space<any>> -> memref<24x128xf32, #tpu.memory_space<any>>
    %c0_i32_4 = arith.constant 0 : i32
    %c0_i32_5 = arith.constant 0 : i32
    %12 = tpu.memref_slice %arg7[%0, %c0_i32_4, %c0_i32_5] : memref<2x24x128xf32, #tpu.memory_space<vmem>> -> memref<1x24x128xf32, #tpu.memory_space<vmem>>
    %13 = tpu.memref_squeeze %12 : memref<1x24x128xf32, #tpu.memory_space<vmem>> -> memref<24x128xf32, #tpu.memory_space<vmem>>
    %14 = tpu.memref_slice %arg8[%0] : memref<2x!tpu.dma_semaphore, #tpu.memory_space<semaphore_mem>> -> memref<1x!tpu.dma_semaphore, #tpu.memory_space<semaphore_mem>>
    %15 = tpu.memref_squeeze %14 : memref<1x!tpu.dma_semaphore, #tpu.memory_space<semaphore_mem>> -> memref<!tpu.dma_semaphore, #tpu.memory_space<semaphore_mem>>
    tpu.wait_dma2 semaphore(%15 : memref<!tpu.dma_semaphore, #tpu.memory_space<semaphore_mem>>) src(%11 : memref<24x128xf32, #tpu.memory_space<any>>) dst(%13 : memref<24x128xf32, #tpu.memory_space<vmem>>)
    %c0 = arith.constant 0 : index
    %c0_6 = arith.constant 0 : index
    %16 = vector.load %arg5[%c0, %c0_6] : memref<1x128xf32, #tpu.memory_space<vmem>>, vector<1x128xf32>
    %c0_i32_7 = arith.constant 0 : i32
    %c16_i32_8 = arith.constant 16 : i32
    %17 = arith.muli %c0_i32_7, %c16_i32_8 : i32
    %18 = tpu.assume_multiple %17, 8 : i32
    %19 = arith.index_cast %0 : i32 to index
    %20 = arith.index_cast %18 : i32 to index
    %c0_9 = arith.constant 0 : index
    %21 = vector.load %arg7[%19, %20, %c0_9] : memref<2x24x128xf32, #tpu.memory_space<vmem>>, vector<1x16x128xf32>
    %22 = vector.shape_cast %21 : vector<1x16x128xf32> to vector<16x128xf32>
    %c0_10 = arith.constant 0 : index
    %c0_11 = arith.constant 0 : index
    %23 = vector.load %arg3[%c0_10, %c0_11] : memref<3x128xf32, #tpu.memory_space<vmem>>, vector<1x128xf32>
    %24 = vector.broadcast %23 : vector<1x128xf32> to vector<16x128xf32>
    %25 = arith.mulf %22, %24 : vector<16x128xf32>
    %c1_i32_12 = arith.constant 1 : i32
    %26 = arith.addi %18, %c1_i32_12 : i32
    %27 = arith.index_cast %0 : i32 to index
    %28 = arith.index_cast %26 : i32 to index
    %c0_13 = arith.constant 0 : index
    %29 = vector.load %arg7[%27, %28, %c0_13] : memref<2x24x128xf32, #tpu.memory_space<vmem>>, vector<1x16x128xf32>
    %30 = vector.shape_cast %29 : vector<1x16x128xf32> to vector<16x128xf32>
    %c1 = arith.constant 1 : index
    %c0_14 = arith.constant 0 : index
    %31 = vector.load %arg3[%c1, %c0_14] : memref<3x128xf32, #tpu.memory_space<vmem>>, vector<1x128xf32>
    %32 = vector.broadcast %31 : vector<1x128xf32> to vector<16x128xf32>
    %33 = arith.mulf %30, %32 : vector<16x128xf32>
    %34 = arith.addf %25, %33 : vector<16x128xf32>
    %c2_i32_15 = arith.constant 2 : i32
    %35 = arith.addi %18, %c2_i32_15 : i32
    %36 = arith.index_cast %0 : i32 to index
    %37 = arith.index_cast %35 : i32 to index
    %c0_16 = arith.constant 0 : index
    %38 = vector.load %arg7[%36, %37, %c0_16] : memref<2x24x128xf32, #tpu.memory_space<vmem>>, vector<1x16x128xf32>
    %39 = vector.shape_cast %38 : vector<1x16x128xf32> to vector<16x128xf32>
    %c2 = arith.constant 2 : index
    %c0_17 = arith.constant 0 : index
    %40 = vector.load %arg3[%c2, %c0_17] : memref<3x128xf32, #tpu.memory_space<vmem>>, vector<1x128xf32>
    %41 = vector.broadcast %40 : vector<1x128xf32> to vector<16x128xf32>
    %42 = arith.mulf %39, %41 : vector<16x128xf32>
    %43 = arith.addf %34, %42 : vector<16x128xf32>
    %c0_18 = arith.constant 0 : index
    %c0_19 = arith.constant 0 : index
    %44 = vector.load %arg4[%c0_18, %c0_19] : memref<128x128xf32, #tpu.memory_space<vmem>>, vector<128x128xf32>
    %cst = arith.constant dense<0.000000e+00> : vector<16x128xf32>
    %45 = tpu.matmul %43, %44, %cst {dimension_numbers = #tpu.dot_dimension_numbers<[1], [0], [0], [1], [0, 0, 1, 1], [], []>} : vector<16x128xf32>, vector<128x128xf32>, vector<16x128xf32> -> vector<16x128xf32>
    %46 = vector.broadcast %16 : vector<1x128xf32> to vector<16x128xf32>
    %47 = arith.addf %45, %46 : vector<16x128xf32>
    %c0_20 = arith.constant 0 : index
    %48 = arith.index_cast %18 : i32 to index
    %c0_21 = arith.constant 0 : index
    %49 = vector.load %arg6[%c0_20, %48, %c0_21] : memref<1x16x128xf32, #tpu.memory_space<vmem>>, vector<1x16x128xf32>
    %50 = vector.shape_cast %49 : vector<1x16x128xf32> to vector<16x128xf32>
    %51 = vector.shape_cast %47 : vector<16x128xf32> to vector<1x16x128xf32>
    tpu.vector_store %arg6[%c0_20, %48, %c0_21], %51 {strides = array<i32>} : memref<1x16x128xf32, #tpu.memory_space<vmem>>, vector<1x16x128xf32>,
    %c1_i32_22 = arith.constant 1 : i32
    return
  }
  func.func @transform_1(%arg0: i32, %arg1: i32) -> (i32, i32) {
    %c0_i32 = arith.constant 0 : i32
    %c0_i32_0 = arith.constant 0 : i32
    %c0_i32_1 = arith.constant 0 : i32
    return %c0_i32, %c0_i32_0 : i32, i32
  }
  func.func @transform_2(%arg0: i32, %arg1: i32) -> (i32, i32) {
    %c0_i32 = arith.constant 0 : i32
    %c0_i32_0 = arith.constant 0 : i32
    %c0_i32_1 = arith.constant 0 : i32
    return %c0_i32, %c0_i32_0 : i32, i32
  }
  func.func @transform_3(%arg0: i32, %arg1: i32) -> (i32, i32) {
    %c0_i32 = arith.constant 0 : i32
    %c0_i32_0 = arith.constant 0 : i32
    %c0_i32_1 = arith.constant 0 : i32
    return %c0_i32, %c0_i32_0 : i32, i32
  }
  func.func @transform_4(%arg0: i32, %arg1: i32) -> (i32, i32, i32) {
    %c0_i32 = arith.constant 0 : i32
    %c0_i32_0 = arith.constant 0 : i32
    return %arg0, %arg1, %c0_i32 : i32, i32, i32
  }
}

</mosaic_0001>

<bundles_post_ra>
// kernel: separable_conv.1
= control target key start
LH: loop header
LB: loop body
LE: loop exit
PB: predicated region body
PF: predicated region fallthrough
CT: control target
= control target key end

     0   :  { %9 = vsyncpa [#allocation5], 0  ;;  %s993_s0 = inlined_call_operand.vmem [shape: f32[2,24,128], index: 0, kind: input, shape index: {}]   ;;  %s994_s1 = inlined_call_operand.vmem [shape: f32[3,128], index: 1, kind: input, shape index: {}]   ;;  %s995_s2 = inlined_call_operand.vmem [shape: f32[128,128], index: 2, kind: input, shape index: {}]   ;;  %s996_s3 = inlined_call_operand.vmem [shape: f32[1,128], index: 3, kind: input, shape index: {}]   ;;  %s997_s4 = inlined_call_operand.hbm [shape: f32[2,16,128], index: 4, kind: output, shape index: {}]  }
   0x1   :  { %11 = vsyncpa [#allocation5 + $0x1], 0  ;;  %s811_s15 = smov 0   ;;  %s813_s16 = smov 0  }
   0x2   :  { %s815_s17 = smov 0   ;;  %s817_s18 = smov 0  }
   0x3   :  { %s819_s19 = smov 0   ;;  %s821_s20 = smov 0  }
   0x4 LB: > { %s564_s21 = sadd.s32 4294967295, %s781_s20   ;;  %s565_s22 = sadd.s32 4294967294, %s781_s20   ;;  %s781_s20 = sphi %s821_s20, %s17_s20   ;;  %s777_s19 = sphi %s819_s19, %s1004_s19   ;;  %s773_s18 = sphi %s817_s18, %s1003_s18   ;;  %s769_s17 = sphi %s815_s17, %s1002_s17   ;;  %s765_s16 = sphi %s813_s16, %s1001_s16   ;;  %s761_s15 = sphi %s811_s15, %s1000_s15  }
   0x5   : > { %s29_s23 = sadd.s32 1, %s777_s19  ;;  %s101_s24 = sadd.s32 1, %s769_s17 }
   0x6   : > { %p31_p0 = scmp.ge.s32.totalorder %s29_s23, 2  ;;  %p111_p1 = scmp.ne.s32.totalorder %s769_s17, %s765_s16 }
   0x7   : > { %p112_p2 = scmp.eq.s32.totalorder %s564_s21, 1  ;;  %p117_p3 = scmp.ne.s32.totalorder %s765_s16, %s761_s15 }
   0x8   : > { %s1006_s23 = smov (%p31_p0, %s29_s23), 0  ;;  %p118_p5 = scmp.eq.s32.totalorder %s565_s22, 1 }
   0x9   : > { %p851_p4 = por %p112_p2, %p111_p1  ;;  %s96_s26 = ssub.s32 %s777_s19, %s1006_s23 }
   0xa   : > { %p567_p6 = scmp.ge.s32.totalorder %s781_s20, 1  ;;  %p99_p7 = scmp.eq.s32.totalorder %s96_s26, 0 }
   0xb   : > { %p858_p8 = por %p118_p5, %p117_p3  ;;  %p145_p9 = scmp.lt.s32.totalorder %s781_s20, 3 }
   0xc   : > { %s864_s28 = scalar_select %p99_p7, %s769_s17, %s101_s24  }
   0xd   : > { %p146_p10 = pnand %p567_p6, %p145_p9 }
   0xe   : > { %s161_s29 = sand.u32 (!%p146_p10), 1, %s765_s16   ;;  %s176_s30 = smul.u32 (!%p146_p10), 24, %s773_s18 }
   0xf   : > { %149 = sbr.rel (%p146_p10) target bundleno = 269 (0x10d), region = 32  ;;  %s568_s5 = sshll.u32 (!%p146_p10), %s161_s29, 4 }
  0x10   : > { %s178_s8 = scalar_lea.vmem (!%p146_p10), %s993_s0, %s176_s30  ;;  %s873_s9 = scalar_lea.vmem (!%p146_p10), [#allocation4], %s568_s5 }
  0x14   : > { %v215_v0 = vld [vmem:[%s178_s8] sm:$0xff]  ;;  %v217_v1 = vld [vmem:[%s178_s8 + $0x8] sm:$0xff]  ;;  %v219_v2 = vld [vmem:[%s178_s8 + $0x10] sm:$0xff] }
  0x15   : > { %216 = vst [vmem:[#allocation2] sm:$0xff] %v215_v0  ;;  %218 = vst [vmem:[#allocation2 + $0x8] sm:$0xff] %v217_v1 }
  0x16   : > { %220 = vst [vmem:[#allocation2 + $0x10] sm:$0xff] %v219_v2 }
  0x17   : > { %228 = vsyncadd [#allocation3], 384 }
  0x18   : > { %753 = dma.done.wait [#allocation3], 384 }
  0x19   : > { %754 = vsyncadd [#allocation3], 4294966912  ;;  %v350_v3 = vld [vmem:[%s995_s2 + $0x78] sm:$0xff]  ;;  %v349_v4 = vld [vmem:[%s995_s2 + $0x70] sm:$0xff]  ;;  %s592_s7 = sshll.u32 %s773_s18, 8  ;;  %s450_s8 = sshll.u32 %s873_s9, 4  ;;  %s942_s8 = int_to_ptr.vmem [resolvable:$true] %s450_s8 }
  0x1a   : > { %611 = vmatprep.subr.mxu0 %v350_v3  ;;  %v348_v5 = vld [vmem:[%s995_s2 + $0x68] sm:$0xff]  ;;  %v347_v6 = vld [vmem:[%s995_s2 + $0x60] sm:$0xff]  ;;  %v346_v8 = vld [vmem:[%s995_s2 + $0x58] sm:$0xff]  ;;  %s940_s12 = scalar_lea.hbm %s997_s4, %s592_s7  ;;  %s948_s13 = scalar_lea.sflag [#allocation5], %s161_s29 }
  0x1b   : > { %612 = vmatpush3.msra.mxu0 %v350_v3  ;;  %v577_v9 = vld [vmem:[%s994_s1] ss:$0 sm:$0xff]  ;;  %v580_v12 = vld [vmem:[%s994_s1 + $0x1] ss:$0 sm:$0xff]  ;;  %v345_v14 = vld [vmem:[%s995_s2 + $0x50] sm:$0xff]  ;;  %s703_s18 = scalar_lea.vmem %s942_s8, 256 }
  0x1c   : > { %613 = vmatprep.subr.mxu0 %v349_v4  ;;  %v298_v7 = vld [vmem:[#allocation2] sm:$0xff]  ;;  %v344_v18 = vld [vmem:[%s995_s2 + $0x48] sm:$0xff]  ;;  %v342_v22 = vld [vmem:[%s995_s2 + $0x38] sm:$0xff]  ;;  %p704_p11 = scmp.ne.s32.totalorder %s942_s8, %s703_s18  ;;  %s783_s14 = smov [#allocation4]  }
  0x1d   : > { %614 = vmatpush3.msra.mxu0 %v349_v4  ;;  %v578_v10 = vld [vmem:[#allocation2 + $0x1] sm:$0xff]  ;;  %v305_v11 = vmul.f32 %v577_v9, %v298_v7  ;;  %v341_v23 = vld [vmem:[%s995_s2 + $0x30] sm:$0xff]  ;;  %v338_v30 = vld [vmem:[%s995_s2 + $0x18] sm:$0xff]  ;;  %s707_s21 = sshll.u32 %s783_s14, 4  ;;  %s708_s21 = int_to_ptr.vmem [resolvable:$false] %s707_s21 }
  0x1e   : > { %615 = vmatprep.subr.mxu0 %v348_v5  ;;  %v581_v13 = vld [vmem:[#allocation2 + $0x2] sm:$0xff]  ;;  %v317_v15 = vmul.f32 %v580_v12, %v578_v10  ;;  %v582_v31 = vld [vmem:[#allocation2 + $0xa] sm:$0xff]  ;;  %v584_v38 = vld [vmem:[%s996_s3] ss:$0 sm:$0xff]  ;;  %p705_p12 = pnand %p704_p11, %p851_p4  ;;  %s709_s22 = scalar_lea.vmem %s708_s21, 512 }
  0x1f   : > { %616 = vmatpush3.msra.mxu0 %v348_v5  ;;  %v583_v16 = vld [vmem:[%s994_s1 + $0x2] ss:$0 sm:$0xff]  ;;  %v340_v24 = vld [vmem:[%s995_s2 + $0x28] sm:$0xff]  ;;  %v337_v32 = vld [vmem:[%s995_s2 + $0x10] sm:$0xff]  ;;  %p710_p0 = scmp.lt.s32.totalorder %s942_s8, %s708_s21  ;;  %p711_p1 = scmp.lt.s32.totalorder %s709_s22, %s703_s18 }
  0x20   : > { %617 = vmatprep.subr.mxu0 %v347_v6  ;;  %v331_v17 = vmul.f32 %v583_v16, %v581_v13  ;;  %v319_v19 = vadd.f32 %v317_v15, %v305_v11  ;;  %v343_v20 = vld [vmem:[%s995_s2 + $0x40] sm:$0xff]  ;;  %v299_v25 = vld [vmem:[#allocation2 + $0x8] sm:$0xff]  ;;  %v332_v33 = vmul.f32 %v583_v16, %v582_v31  ;;  %p706_p13 = pneg %p705_p12 }
  0x21   : > { %618 = vmatpush3.msra.mxu0 %v347_v6  ;;  %v579_v26 = vld [vmem:[#allocation2 + $0x9] sm:$0xff]  ;;  %v339_v27 = vld [vmem:[%s995_s2 + $0x20] sm:$0xff]  ;;  %v306_v28 = vmul.f32 %v577_v9, %v299_v25  ;;  %p712_p2 = por %p711_p1, %p710_p0 }
  0x22   : > { %619 = vmatprep.subr.mxu0 %v346_v8  ;;  %v333_v21 = vadd.f32 %v331_v17, %v319_v19  ;;  %v318_v29 = vmul.f32 %v580_v12, %v579_v26  ;;  %v336_v35 = vld [vmem:[%s995_s2 + $0x8] sm:$0xff]  ;;  %v335_v36 = vld [vmem:[%s995_s2] sm:$0xff] }
  0x23   : > { %620 = vmatpush3.msra.mxu0 %v346_v8  ;;  %p713_p3 = pnand %p712_p2, %p706_p13 }
  0x24   : > { %621 = vmatprep.subr.mxu0 %v345_v14  ;;  %643 = vmatprep.mubr.f32.mxu0 %v333_v21  ;;  %v320_v34 = vadd.f32 %v318_v29, %v306_v28 }
  0x25   : > { %622 = vmatpush3.msra.mxu0 %v345_v14 }
  0x26   : > { %623 = vmatprep.subr.mxu0 %v344_v18  ;;  %v334_v37 = vadd.f32 %v332_v33, %v320_v34 }
  0x27   : > { %624 = vmatpush3.msra.mxu0 %v344_v18 }
  0x28   : > { %625 = vmatprep.subr.mxu0 %v343_v20 }
  0x29   : > { %626 = vmatpush3.msra.mxu0 %v343_v20 }
  0x2a   : > { %627 = vmatprep.subr.mxu0 %v342_v22 }
  0x2b   : > { %628 = vmatpush3.msra.mxu0 %v342_v22 }
  0x2c   : > { %629 = vmatprep.subr.mxu0 %v341_v23 }
  0x2d   : > { %630 = vmatpush3.msra.mxu0 %v341_v23 }
  0x2e   : > { %631 = vmatprep.subr.mxu0 %v340_v24 }
  0x2f   : > { %632 = vmatpush3.msra.mxu0 %v340_v24 }
  0x30   : > { %633 = vmatprep.subr.mxu0 %v339_v27 }
  0x31   : > { %634 = vmatpush3.msra.mxu0 %v339_v27 }
  0x32   : > { %635 = vmatprep.subr.mxu0 %v338_v30 }
  0x33   : > { %636 = vmatpush3.msra.mxu0 %v338_v30 }
  0x34   : > { %637 = vmatprep.subr.mxu0 %v337_v32 }
  0x35   : > { %638 = vmatpush3.msra.mxu0 %v337_v32 }
  0x36   : > { %639 = vmatprep.subr.mxu0 %v336_v35 }
  0x37   : > { %640 = vmatpush3.msra.mxu0 %v336_v35 }
  0x38   : > { %641 = vmatprep.subr.mxu0 %v335_v36 }
  0x39   : > { %642 = vmatpush3.msra.mxu0 %v335_v36 }
  0x3a   : > { %644 = vmatmul.mubr.f32.vlgmr.msra.gmra.mxu0 %v334_v37 }
  0xfa   : > { %v645_v39 = vpop.f32.mrf.mxu0 }
  0xfb   : > { %v429_v40 = vadd.f32 %v645_v39, %v584_v38 }
  0xfc   : > { %v423_v41 = vpop.f32.mrf.mxu0 }
  0xfd   : > { %433 = vst [vmem:[%s873_s9 + $0x8] sm:$0xff] %v429_v40  ;;  %v424_v42 = vadd.f32 %v584_v38, %v423_v41 }
  0xff   : > { %432 = vst [vmem:[%s873_s9] sm:$0xff] %v424_v42 }
 0x100   : > { %716 = shalt.err (!%p713_p3)
}
 0x101   : > { %s717_s29 = scalar_lea.hbm %s940_s12, 256  ;;  %s721_s26 = scalar_lea.hbm %s997_s4, 512 }
 0x102   : > { %p718_p5 = scmp.ne.s32.totalorder %s940_s12, %s717_s29  ;;  %p722_p9 = scmp.lt.s32.totalorder %s940_s12, %s997_s4 }
 0x103   : > { %p723_p10 = scmp.lt.s32.totalorder %s721_s26, %s717_s29 }
 0x104   : > { %p719_p6 = pnand %p718_p5, %p851_p4 }
 0x105   : > { %p724_p11 = por %p723_p10, %p722_p9 }
 0x106   : > { %p720_p7 = pneg %p719_p6 }
 0x108   : > { %p725_p12 = pnand %p724_p11, %p720_p7 }
 0x10a   : > { %728 = shalt.err (!%p725_p12)
}
 0x10b   : > { %s784_s6 = smov 128   ;;  %s785_s7 = smov 8  }
 0x10c   : > { %646 = dma.vmem_to_hbm [thread:$0]  (%p851_p4), %s942_s8, 256, %s940_s12, %s948_s13, %s784_s6, %s784_s6, %s785_s7  }
 0x10d PF: > { %p652_p13 = scmp.ge.s32.totalorder %s781_s20, 2  ;;  %s465_s10 = sand.u32 1, %s761_s15  }
 0x10e   : > { %s466_s11 = scalar_lea.sflag [#allocation5], %s465_s10 }
 0x10f   : > { %p649_p0 = pnand %p652_p13, %p858_p8 }
 0x111   : > { %p650_p1 = pneg %p649_p0 }
 0x113   : > { %756 = dma.done.wait (%p650_p1), %s466_s11, 256  }
 0x114   : > { %758 = vsyncadd (%p650_p1), %s466_s11, 4294967040  ;;  %s17_s20 = sadd.s32 1, %s781_s20   ;;  %s1000_s15 = smov %s765_s16 }
 0x115   : > { %p14_p2 = scmp.ge.s32.totalorder %s17_s20, 4   ;;  %s1001_s16 = smov %s769_s17 }
 0x116   : > { %s1002_s17 = smov %s864_s28  ;;  %s1003_s18 = smov %s777_s19 }
 0x117   : > { %s1004_s19 = smov %s1006_s23  ;;  %16 = sbr.rel (!%p14_p2) target bundleno = 4 (0x4), region = 167 }
 0x11c   :  { %471 = vsyncpa [#allocation5], 1 }
 0x11d   :  { %473 = vsyncpa [#allocation5 + $0x1], 1 }
 0x11e   :  { %474 = vsyncmov [#allocation3] }
 0x121   :  { %s475_s25 = vpop.sfrf %474 }
 0x122   :  { %p590_p4 = scmp.ne.s32.totalorder %s475_s25, 0 }
 0x124   :  { %479 = shalt.err (%p590_p4)  }
 0x125   :  { %481 = vsyncmov [#allocation3 + $0x1] }
 0x128   :  { %s482_s27 = vpop.sfrf %481 }
 0x129   :  { %p591_p8 = scmp.ne.s32.totalorder %s482_s27, 0 }
 0x12b   :  { %486 = shalt.err (%p591_p8)  }

</bundles_post_ra>
